<compile_context>
chip_gen: v7x
topology: tpu7x:2x2x1
jax: 0.10.0
libtpu: 0.0.40
codegen_flags: <defaults>
</compile_context>

<pallas_src>
import jax
import jax.numpy as jnp
from jax.experimental import pallas as pl
from jax.experimental.pallas import tpu as pltpu


def mlp_kernel(x_ref, w1_ref, b1_ref, w2_ref, b2_ref, o_ref):
    # In-kernel cast of the streamed f32 x tile to the (bf16) weight dtype: a VPU
    # cast that hides completely under the x DMA. f32 accumulation on the MXU.
    x = x_ref[...].astype(w1_ref.dtype)
    h = jnp.dot(x, w1_ref[...], preferred_element_type=jnp.float32)
    h = jnp.maximum(h + b1_ref[...], 0.0)
    logits = jnp.dot(h.astype(w2_ref.dtype), w2_ref[...],
                     preferred_element_type=jnp.float32) + b2_ref[...]
    # Stable log_softmax along the class axis (f32, EUP exp/log are free filler).
    m = jnp.max(logits, axis=-1, keepdims=True)
    shifted = logits - m
    lse = jnp.log(jnp.sum(jnp.exp(shifted), axis=-1, keepdims=True))
    o_ref[...] = (shifted - lse).astype(o_ref.dtype)


def _round_up(n, m):
    return ((n + m - 1) // m) * m


def simple_nn_forward(x, w1, b1, w2, b2, *, tm=2048, weight_dtype=jnp.bfloat16):
    """x: (B, 1, 28, 28) or (B, 784). Returns (B, 10) f32 log-probabilities."""
    x2d = x.reshape(-1, 28 * 28)                 # stream x as-is (no wrapper cast/pad)
    w1 = w1.astype(weight_dtype)
    w2 = w2.astype(weight_dtype)
    b1 = b1.astype(jnp.float32).reshape(1, -1)
    b2 = b2.astype(jnp.float32).reshape(1, -1)

    B, K = x2d.shape
    H = w1.shape[1]
    N = w2.shape[1]

    # --- batch-tile selection (no padding; ragged tails become partial edge blocks) ---
    b8 = _round_up(B, 8)
    if b8 <= tm:
        if b8 >= 4 * 128:
            # Mid-size batch: 4 even tiles so v7x's two TensorCores each get >=2
            # pipelined grid steps (keeps the x DMA overlapped with compute).
            tm_eff = _round_up(pl.cdiv(b8, 4), 8)
        else:
            # Small batch: one block equal to the full batch dim (legal for any B).
            tm_eff = B
    else:
        tm_eff = tm                              # multiple of 8; edge block is masked
    n_tiles = pl.cdiv(B, tm_eff)

    x_bytes = jnp.dtype(x2d.dtype).itemsize
    w_bytes = jnp.dtype(weight_dtype).itemsize
    cost = pl.CostEstimate(
        flops=2 * B * K * H + 2 * B * H * N,
        transcendentals=B * (N + 1),
        bytes_accessed=B * K * x_bytes + B * N * 4
                       + (K * H + H * N) * w_bytes + (H + N) * 4,
    )

    out = pl.pallas_call(
        mlp_kernel,
        out_shape=jax.ShapeDtypeStruct((B, N), jnp.float32),
        grid_spec=pltpu.PrefetchScalarGridSpec(
            num_scalar_prefetch=0,
            grid=(n_tiles,),
            in_specs=[
                pl.BlockSpec((tm_eff, K), lambda i: (i, 0)),   # x tile (streamed)
                pl.BlockSpec((K, H), lambda i: (0, 0)),        # W1 (resident, ~50 KB bf16)
                pl.BlockSpec((1, H), lambda i: (0, 0)),        # b1
                pl.BlockSpec((H, N), lambda i: (0, 0)),        # W2
                pl.BlockSpec((1, N), lambda i: (0, 0)),        # b2
            ],
            out_specs=pl.BlockSpec((tm_eff, N), lambda i: (i, 0)),
        ),
        compiler_params=pltpu.CompilerParams(
            dimension_semantics=("parallel",),
            vmem_limit_bytes=32 * 1024 * 1024,
        ),
        cost_estimate=cost,
    )(x2d, w1, b1, w2, b2)

    return out


if __name__ == "__main__":
    hidden_size = 32

    key = jax.random.PRNGKey(0)
    kx, kw1, kb1, kw2, kb2 = jax.random.split(key, 5)

    # Deterministic synthetic parameters (shapes follow nn.Linear(784, H), nn.Linear(H, 10)).
    w1 = jax.random.normal(kw1, (28 * 28, hidden_size), dtype=jnp.float32) * 0.02
    b1 = jax.random.normal(kb1, (1, hidden_size), dtype=jnp.float32) * 0.02
    w2 = jax.random.normal(kw2, (hidden_size, 10), dtype=jnp.float32) * 0.02
    b2 = jax.random.normal(kb2, (1, 10), dtype=jnp.float32) * 0.02

    def ref_fn(x):
        x2d = x.reshape(-1, 28 * 28)
        h = jnp.maximum(x2d @ w1 + b1, 0.0)
        return jax.nn.log_softmax(h @ w2 + b2, axis=1)

    # batch=8: exact aligned tile; batch=20: single full-batch block (B % 8 != 0);
    # batch=600: 4-way split with a masked partial edge block.
    for batch in (8, 20, 600):
        x = jax.random.normal(kx, (batch, 1, 28, 28), dtype=jnp.float32)
        out = jax.block_until_ready(simple_nn_forward(x, w1, b1, w2, b2))
        ref = ref_fn(x)
        assert out.shape == (batch, 10)
        # bf16 weights / bf16 MXU operands vs. f32 reference -> loosened tolerance
        # (f32 accumulation and f32 epilogue are kept).
        assert jnp.allclose(out, ref, atol=2e-2, rtol=2e-2), (
            f"batch={batch}: max abs err {jnp.max(jnp.abs(out - ref))}"
        )

    print("KERNEL_OK")
</pallas_src>

<mosaic_0001>
module attributes {stable_mosaic.version = 11 : i64} {
  func.func @mlp_kernel(%arg0: i32, %arg1: memref<8x784xf32, #tpu.memory_space<vmem>>, %arg2: memref<784x32xbf16, #tpu.memory_space<vmem>>, %arg3: memref<1x32xf32, #tpu.memory_space<vmem>>, %arg4: memref<32x10xbf16, #tpu.memory_space<vmem>>, %arg5: memref<1x10xf32, #tpu.memory_space<vmem>>, %arg6: memref<8x10xf32, #tpu.memory_space<vmem>>) attributes {dimension_semantics = [#tpu.dimension_semantics<parallel>], iteration_bounds = array<i64: 1>, scalar_prefetch = 0 : i64, scratch_operands = 0 : i64, tpu.core_type = #tpu.core_type<tc>, window_params = [{transform_indices = @transform_0, window_bounds = array<i64: 8, 784>}, {pipeline_mode = #tpu.pipeline_mode<synchronous>, transform_indices = @transform_1, window_bounds = array<i64: 784, 32>}, {pipeline_mode = #tpu.pipeline_mode<synchronous>, transform_indices = @transform_2, window_bounds = array<i64: 1, 32>}, {pipeline_mode = #tpu.pipeline_mode<synchronous>, transform_indices = @transform_3, window_bounds = array<i64: 32, 10>}, {pipeline_mode = #tpu.pipeline_mode<synchronous>, transform_indices = @transform_4, window_bounds = array<i64: 1, 10>}, {transform_indices = @transform_5, window_bounds = array<i64: 8, 10>}]} {
    %c0 = arith.constant 0 : index
    %c0_0 = arith.constant 0 : index
    %0 = vector.load %arg1[%c0, %c0_0] : memref<8x784xf32, #tpu.memory_space<vmem>>, vector<8x784xf32>
    %1 = arith.truncf %0 : vector<8x784xf32> to vector<8x784xbf16>
    %c0_1 = arith.constant 0 : index
    %c0_2 = arith.constant 0 : index
    %2 = vector.load %arg2[%c0_1, %c0_2] : memref<784x32xbf16, #tpu.memory_space<vmem>>, vector<784x32xbf16>
    %cst = arith.constant dense<0.000000e+00> : vector<8x32xf32>
    %3 = tpu.matmul %1, %2, %cst {dimension_numbers = #tpu.dot_dimension_numbers<[1], [0], [0], [1], [0, 0, 1, 1], [], []>} : vector<8x784xbf16>, vector<784x32xbf16>, vector<8x32xf32> -> vector<8x32xf32>
    %c0_3 = arith.constant 0 : index
    %c0_4 = arith.constant 0 : index
    %4 = vector.load %arg3[%c0_3, %c0_4] : memref<1x32xf32, #tpu.memory_space<vmem>>, vector<1x32xf32>
    %5 = vector.broadcast %4 : vector<1x32xf32> to vector<8x32xf32>
    %6 = arith.addf %3, %5 : vector<8x32xf32>
    %cst_5 = arith.constant 0.000000e+00 : f32
    %7 = vector.broadcast %cst_5 : f32 to vector<8x32xf32>
    %8 = arith.maximumf %6, %7 : vector<8x32xf32>
    %9 = arith.truncf %8 : vector<8x32xf32> to vector<8x32xbf16>
    %c0_6 = arith.constant 0 : index
    %c0_7 = arith.constant 0 : index
    %10 = vector.load %arg4[%c0_6, %c0_7] : memref<32x10xbf16, #tpu.memory_space<vmem>>, vector<32x10xbf16>
    %cst_8 = arith.constant dense<0.000000e+00> : vector<8x10xf32>
    %11 = tpu.matmul %9, %10, %cst_8 {dimension_numbers = #tpu.dot_dimension_numbers<[1], [0], [0], [1], [0, 0, 1, 1], [], []>} : vector<8x32xbf16>, vector<32x10xbf16>, vector<8x10xf32> -> vector<8x10xf32>
    %c0_9 = arith.constant 0 : index
    %c0_10 = arith.constant 0 : index
    %12 = vector.load %arg5[%c0_9, %c0_10] : memref<1x10xf32, #tpu.memory_space<vmem>>, vector<1x10xf32>
    %13 = vector.broadcast %12 : vector<1x10xf32> to vector<8x10xf32>
    %14 = arith.addf %11, %13 : vector<8x10xf32>
    %cst_11 = arith.constant dense<0xFF800000> : vector<8xf32>
    %15 = vector.multi_reduction <maximumf>, %14, %cst_11 [1] : vector<8x10xf32> to vector<8xf32>
    %16 = vector.shape_cast %15 : vector<8xf32> to vector<8x1xf32>
    %17 = vector.broadcast %16 : vector<8x1xf32> to vector<8x10xf32>
    %18 = arith.subf %14, %17 : vector<8x10xf32>
    %19 = math.exp %18 : vector<8x10xf32>
    %cst_12 = arith.constant dense<0.000000e+00> : vector<8xf32>
    %20 = vector.multi_reduction <add>, %19, %cst_12 [1] : vector<8x10xf32> to vector<8xf32>
    %21 = vector.shape_cast %20 : vector<8xf32> to vector<8x1xf32>
    %22 = math.log %21 : vector<8x1xf32>
    %23 = vector.broadcast %22 : vector<8x1xf32> to vector<8x10xf32>
    %24 = arith.subf %18, %23 : vector<8x10xf32>
    %c0_13 = arith.constant 0 : index
    %c0_14 = arith.constant 0 : index
    %25 = vector.load %arg6[%c0_13, %c0_14] : memref<8x10xf32, #tpu.memory_space<vmem>>, vector<8x10xf32>
    tpu.vector_store %arg6[%c0_13, %c0_14], %24 {strides = array<i32>} : memref<8x10xf32, #tpu.memory_space<vmem>>, vector<8x10xf32>,
    return
  }
  func.func @transform_0(%arg0: i32) -> (i32, i32) {
    %c0_i32 = arith.constant 0 : i32
    %c0_i32_0 = arith.constant 0 : i32
    return %arg0, %c0_i32 : i32, i32
  }
  func.func @transform_1(%arg0: i32) -> (i32, i32) {
    %c0_i32 = arith.constant 0 : i32
    %c0_i32_0 = arith.constant 0 : i32
    %c0_i32_1 = arith.constant 0 : i32
    return %c0_i32, %c0_i32_0 : i32, i32
  }
  func.func @transform_2(%arg0: i32) -> (i32, i32) {
    %c0_i32 = arith.constant 0 : i32
    %c0_i32_0 = arith.constant 0 : i32
    %c0_i32_1 = arith.constant 0 : i32
    return %c0_i32, %c0_i32_0 : i32, i32
  }
  func.func @transform_3(%arg0: i32) -> (i32, i32) {
    %c0_i32 = arith.constant 0 : i32
    %c0_i32_0 = arith.constant 0 : i32
    %c0_i32_1 = arith.constant 0 : i32
    return %c0_i32, %c0_i32_0 : i32, i32
  }
  func.func @transform_4(%arg0: i32) -> (i32, i32) {
    %c0_i32 = arith.constant 0 : i32
    %c0_i32_0 = arith.constant 0 : i32
    %c0_i32_1 = arith.constant 0 : i32
    return %c0_i32, %c0_i32_0 : i32, i32
  }
  func.func @transform_5(%arg0: i32) -> (i32, i32) {
    %c0_i32 = arith.constant 0 : i32
    %c0_i32_0 = arith.constant 0 : i32
    return %arg0, %c0_i32 : i32, i32
  }
}

</mosaic_0001>

<bundles_post_ra>
// kernel: tpu_custom_call.1
= control target key start
LH: loop header
LB: loop body
LE: loop exit
PB: predicated region body
PF: predicated region fallthrough
CT: control target
= control target key end

     0   :  { %v918_v44 = vmov 0.0   ;;  %vm919_vm0 = vmmov 0   ;;  %vm435_vm1 = vcmask 130048   ;;  %s1148_s0 = inlined_call_operand.vmem [shape: f32[8,784], index: 0, kind: input, shape index: {}]   ;;  %s1149_s1 = inlined_call_operand.vmem [shape: bf16[784,32], index: 1, kind: input, shape index: {}]   ;;  %s1150_s2 = inlined_call_operand.vmem [shape: f32[1,32], index: 2, kind: input, shape index: {}]   ;;  %s1151_s3 = inlined_call_operand.vmem [shape: bf16[32,10], index: 3, kind: input, shape index: {}]   ;;  %s1152_s4 = inlined_call_operand.vmem [shape: f32[1,10], index: 4, kind: input, shape index: {}]   ;;  %s1153_s5 = inlined_call_operand.hbm [shape: f32[8,10], index: 5, kind: output, shape index: {}]  }
   0x1   :  { %v839_v0 = vld [vmem:[%s1149_s1 + $0x40] sm:$0xff]   ;;  %v843_v4 = vld [vmem:[%s1149_s1 + $0x48] sm:$0xff]   ;;  %v847_v8 = vld [vmem:[%s1149_s1 + $0x50] sm:$0xff]  }
   0x2   :  { %v840_v1 = vld [vmem:[%s1149_s1] sm:$0xff]   ;;  %751 = vmatprep.subr.bf16.mxu0 %v839_v0  ;;  %v844_v5 = vld [vmem:[%s1149_s1 + $0x8] sm:$0xff]   ;;  %v848_v9 = vld [vmem:[%s1149_s1 + $0x10] sm:$0xff]  }
   0x3   :  { %v841_v2 = vld [vmem:[%s1149_s1 + $0xc0] sm:$0xff]   ;;  %752 = vmatpush3.bf16.msra.mxu0 %v840_v1  ;;  %v845_v6 = vld [vmem:[%s1149_s1 + $0xc8] sm:$0xff]   ;;  %v849_v10 = vld [vmem:[%s1149_s1 + $0xd0] sm:$0xff]  }
   0x4   :  { %v842_v3 = vld [vmem:[%s1149_s1 + $0x80] sm:$0xff]   ;;  %773 = vmatprep.subr.bf16.mxu1 %v841_v2  ;;  %753 = vmatprep.subr.bf16.mxu0 %v843_v4  ;;  %v846_v7 = vld [vmem:[%s1149_s1 + $0x88] sm:$0xff]   ;;  %v850_v11 = vld [vmem:[%s1149_s1 + $0x90] sm:$0xff]  }
   0x5   :  { %774 = vmatpush3.bf16.msra.mxu1 %v842_v3  ;;  %v851_v12 = vld [vmem:[%s1149_s1 + $0x58] sm:$0xff]   ;;  %v855_v16 = vld [vmem:[%s1149_s1 + $0x60] sm:$0xff]   ;;  %v859_v20 = vld [vmem:[%s1149_s1 + $0x68] sm:$0xff]  }
   0x6   :  { %775 = vmatprep.subr.bf16.mxu1 %v845_v6  ;;  %v852_v13 = vld [vmem:[%s1149_s1 + $0x18] sm:$0xff]   ;;  %v856_v17 = vld [vmem:[%s1149_s1 + $0x20] sm:$0xff]   ;;  %v860_v21 = vld [vmem:[%s1149_s1 + $0x28] sm:$0xff]  }
   0x7   :  { %754 = vmatpush3.bf16.msra.mxu0 %v844_v5  ;;  %v853_v14 = vld [vmem:[%s1149_s1 + $0xd8] sm:$0xff]   ;;  %v857_v18 = vld [vmem:[%s1149_s1 + $0xe0] sm:$0xff]   ;;  %v861_v22 = vld [vmem:[%s1149_s1 + $0xe8] sm:$0xff]  }
   0x8   :  { %755 = vmatprep.subr.bf16.mxu0 %v847_v8  ;;  %v854_v15 = vld [vmem:[%s1149_s1 + $0x98] sm:$0xff]   ;;  %v858_v19 = vld [vmem:[%s1149_s1 + $0xa0] sm:$0xff]   ;;  %v862_v23 = vld [vmem:[%s1149_s1 + $0xa8] sm:$0xff]  }
   0x9   :  { %776 = vmatpush3.bf16.msra.mxu1 %v846_v7  ;;  %v863_v24 = vld [vmem:[%s1149_s1 + $0x70] sm:$0xff]   ;;  %v867_v28 = vld [vmem:[%s1149_s1 + $0x78] sm:$0xff]   ;;  %v23_v31 = vld [vmem:[%s1148_s0 + $0x8] sm:$0xff] }
   0xa   :  { %777 = vmatprep.subr.bf16.mxu1 %v849_v10  ;;  %v864_v25 = vld [vmem:[%s1149_s1 + $0x30] sm:$0xff]   ;;  %v868_v29 = vld [vmem:[%s1149_s1 + $0x38] sm:$0xff]   ;;  %v30_v32 = vpack.c.bf16 %v23_v31, %v23_v31  ;;  %v22_v34 = vld [vmem:[%s1148_s0] sm:$0xff] }
   0xb   :  { %756 = vmatpush3.bf16.msra.mxu0 %v848_v9  ;;  %v865_v26 = vld [vmem:[%s1149_s1 + $0xf0] sm:$0xff]   ;;  %v869_v30 = vld [vmem:[%s1149_s1 + $0xf8] sm:$0xff]   ;;  %v29_v35 = vpack.c.bf16 %v22_v34, %v22_v34  ;;  %v871_v36 = vld [vmem:[%s1149_s1 + $0x140] sm:$0xff]  }
   0xc   :  { %757 = vmatprep.subr.bf16.mxu0 %v851_v12  ;;  %v866_v27 = vld [vmem:[%s1149_s1 + $0xb0] sm:$0xff]   ;;  %v870_v33 = vld [vmem:[%s1149_s1 + $0xb8] sm:$0xff]   ;;  %471 = vmatprep.mubr.bf16.mxu0 %v30_v32  ;;  %v872_v39 = vld [vmem:[%s1149_s1 + $0x100] sm:$0xff]  }
   0xd   :  { %778 = vmatpush3.bf16.msra.mxu1 %v850_v11  ;;  %v25_v37 = vld [vmem:[%s1148_s0 + $0x18] sm:$0xff]  ;;  %v24_v40 = vld [vmem:[%s1148_s0 + $0x10] sm:$0xff]  ;;  %v873_v42 = vld [vmem:[%s1149_s1 + $0x148] sm:$0xff]  }
   0xe   :  { %779 = vmatprep.subr.bf16.mxu1 %v853_v14  ;;  %v32_v38 = vpack.c.bf16 %v25_v37, %v25_v37  ;;  %v31_v41 = vpack.c.bf16 %v24_v40, %v24_v40  ;;  %v874_v43 = vld [vmem:[%s1149_s1 + $0x108] sm:$0xff]   ;;  %v875_v45 = vld [vmem:[%s1149_s1 + $0x150] sm:$0xff]   ;;  %v877_v47 = vld [vmem:[%s1149_s1 + $0x158] sm:$0xff]  }
   0xf   :  { %758 = vmatpush3.bf16.msra.mxu0 %v852_v13  ;;  %v876_v46 = vld [vmem:[%s1149_s1 + $0x110] sm:$0xff]   ;;  %v878_v48 = vld [vmem:[%s1149_s1 + $0x118] sm:$0xff]   ;;  %v879_v49 = vld [vmem:[%s1149_s1 + $0x160] sm:$0xff]  }
  0x10   :  { %759 = vmatprep.subr.bf16.mxu0 %v855_v16  ;;  %511 = vmatprep.mubr.bf16.mxu1 %v32_v38  ;;  %v880_v50 = vld [vmem:[%s1149_s1 + $0x120] sm:$0xff]   ;;  %v881_v51 = vld [vmem:[%s1149_s1 + $0x168] sm:$0xff]   ;;  %v28_v56 = vld [vmem:[%s1148_s0 + $0x30] sm:$0xff] }
  0x11   :  { %780 = vmatpush3.bf16.msra.mxu1 %v854_v15  ;;  %v882_v52 = vld [vmem:[%s1149_s1 + $0x128] sm:$0xff]   ;;  %v887_v53 = vld [vmem:[%s1149_s1 + $0x180] sm:$0xff]   ;;  %v35_v57 = vpack.c.bf16 %v28_v56, %v28_v56 }
  0x12   :  { %781 = vmatprep.subr.bf16.mxu1 %v857_v18  ;;  %v27_v54 = vld [vmem:[%s1148_s0 + $0x28] sm:$0xff] }
  0x13   :  { %760 = vmatpush3.bf16.msra.mxu0 %v856_v17  ;;  %v34_v55 = vpack.c.bf16 %v27_v54, %v27_v54 }
  0x14   :  { %761 = vmatprep.subr.bf16.mxu0 %v859_v20 }
  0x15   :  { %782 = vmatpush3.bf16.msra.mxu1 %v858_v19 }
  0x16   :  { %783 = vmatprep.subr.bf16.mxu1 %v861_v22 }
  0x17   :  { %762 = vmatpush3.bf16.msra.mxu0 %v860_v21 }
  0x18   :  { %763 = vmatprep.subr.bf16.mxu0 %v863_v24 }
  0x19   :  { %784 = vmatpush3.bf16.msra.mxu1 %v862_v23 }
  0x1a   :  { %785 = vmatprep.subr.bf16.mxu1 %v865_v26 }
  0x1b   :  { %764 = vmatpush3.bf16.msra.mxu0 %v864_v25 }
  0x1c   :  { %765 = vmatprep.subr.bf16.mxu0 %v867_v28 }
  0x1d   :  { %786 = vmatpush3.bf16.msra.mxu1 %v866_v27 }
  0x1e   :  { %787 = vmatprep.subr.bf16.mxu1 %v869_v30 }
  0x1f   :  { %766 = vmatpush3.bf16.msra.mxu0 %v868_v29 }
  0x20   :  { %795 = vmatprep.subr.bf16.mxu0 %v871_v36 }
  0x21   :  { %788 = vmatpush3.bf16.msra.mxu1 %v870_v33 }
  0x22   :  { %472 = vmatmul.mubr.bf16.vlgmr.msra.gmra.mrb[0].mxu0 %v29_v35  ;;  %822 = vmatprep.subr.bf16.mxu1 %v918_v44 }
  0x23   :  { %796 = vmatpush3.bf16.msra.mxu0 %v872_v39 }
  0x24   :  { %512 = vmatmul.mubr.bf16.vlgmr.msra.gmra.mrb[0].mxu1 %v31_v41  ;;  %797 = vmatprep.subr.bf16.mxu0 %v873_v42 }
  0x25   :  { %824 = vmatprep.mubr.msk.bf16.mxu1 %vm919_vm0, %v918_v44  ;;  %823 = vmatpush3.bf16.msra.mxu1 %v887_v53 }
  0x27   :  { %798 = vmatpush3.bf16.msra.mxu0 %v874_v43 }
  0x28   :  { %799 = vmatprep.subr.bf16.mxu0 %v875_v45 }
  0x2b   :  { %800 = vmatpush3.bf16.msra.mxu0 %v876_v46 }
  0x2c   :  { %801 = vmatprep.subr.bf16.mxu0 %v877_v47 }
  0x2f   :  { %802 = vmatpush3.bf16.msra.mxu0 %v878_v48 }
  0x30   :  { %803 = vmatprep.subr.bf16.mxu0 %v879_v49 }
  0x33   :  { %804 = vmatpush3.bf16.msra.mxu0 %v880_v50 }
  0x34   :  { %10 = vsyncpa [#allocation3], 0  ;;  %805 = vmatprep.subr.bf16.mxu0 %v881_v51  ;;  %v883_v58 = vld [vmem:[%s1149_s1 + $0x170] sm:$0xff]   ;;  %551 = vmatprep.mubr.bf16.mxu0 %v34_v55  ;;  %v885_v60 = vld [vmem:[%s1149_s1 + $0x178] sm:$0xff]   ;;  %vm624_vm2 = vcmask 261120   ;;  %vm668_vm3 = vcmask 80896  }
  0x35   :  { %828 = vmatprep.subr.bf16.mxu1 %v918_v44  ;;  %825 = vmatmul.mubr.msk.bf16.vlgmr.msra.gmra.mrb[4].mxu1 %vm435_vm1, %v35_v57  ;;  %v884_v59 = vld [vmem:[%s1149_s1 + $0x130] sm:$0xff]   ;;  %v886_v61 = vld [vmem:[%s1149_s1 + $0x138] sm:$0xff]   ;;  %v26_v62 = vld [vmem:[%s1148_s0 + $0x20] sm:$0xff] }
  0x36   :  { %832 = vmatprep.mubr.msk.bf16.mxu1 %vm919_vm0, %v918_v44  ;;  %v33_v63 = vpack.c.bf16 %v26_v62, %v26_v62  ;;  %v888_v0 = vld [vmem:[%s1151_s3] sm:$0xff]   ;;  %v889_v1 = vld [vmem:[%s1151_s3 + $0x8] sm:$0xff]   ;;  %s920_s3 = smov [#allocation2]  }
  0x37   :  { %806 = vmatpush3.bf16.msra.mxu0 %v882_v52  ;;  %829 = vmatpush3.bf16.msra.mxu1 %v888_v0  ;;  %v696_v3 = vld [vmem:[%s1150_s2] ss:$0 sm:$0xff] }
  0x38   :  { %807 = vmatprep.subr.bf16.mxu0 %v883_v58  ;;  %830 = vmatprep.subr.bf16.mxu1 %v918_v44  ;;  %v747_v28 = vld [vmem:[%s1152_s4] ss:$0 sm:$0xff]  ;;  %s688_s4 = sshll.u32 %s920_s3, 4  ;;  %s689_s4 = int_to_ptr.vmem [resolvable:$true] %s688_s4 }
  0x39   :  { %s894_s10 = scalar_lea.vmem %s689_s4, 128  ;;  %p899_p1 = scmp.lt.s32.totalorder %s689_s4, %s689_s4 }
  0x3a   :  { %p895_p0 = scmp.ne.s32.totalorder %s689_s4, %s894_s10  ;;  %p900_p2 = scmp.lt.s32.totalorder %s894_s10, %s894_s10 }
  0x3b   :  { %808 = vmatpush3.bf16.msra.mxu0 %v884_v59  ;;  %831 = vmatpush3.bf16.msra.mxu1 %v889_v1 }
  0x3c   :  { %809 = vmatprep.subr.bf16.mxu0 %v885_v60  ;;  %p901_p3 = por %p900_p2, %p899_p1 }
  0x3e   :  { %p902_p4 = pnand %p901_p3, %p895_p0 }
  0x3f   :  { %810 = vmatpush3.bf16.msra.mxu0 %v886_v61 }
  0x42   :  { %552 = vmatmul.mubr.bf16.vlgmr.msra.gmra.mrb[4].mxu0 %v33_v63 }
  0xf5   :  { %v767_v2 = vpop.f32.mrb[0].mxu0 }
  0xf6   :  { %v768_v4 = vpop.f32.mrb[1].mxu0 }
  0xf7   :  { %v769_v5 = vadd.f32 %v768_v4, %v767_v2  ;;  %v770_v6 = vpop.f32.mrb[2].mxu0  ;;  %v789_v7 = vpop.f32.mrb[0].mxu1 }
  0xf8   :  { %v771_v8 = vpop.f32.mrb[3].mxu0  ;;  %v790_v10 = vpop.f32.mrb[1].mxu1 }
  0xf9   :  { %v474_v9 = vadd.f32 %v769_v5, %v696_v3  ;;  %v791_v11 = vadd.f32 %v790_v10, %v789_v7  ;;  %v792_v12 = vpop.f32.mrb[2].mxu1 }
  0xfa   :  { %v793_v13 = vpop.f32.mrb[3].mxu1 }
  0xfb   :  { %v514_v14 = vadd.f32 %v791_v11, %v474_v9 }
 0x108   :  { %v593_v15 = vpop.f32.mrb[4].mxu1 }
 0x109   :  { %v826_v16 = vpop.f32.mrb[5].mxu1 }
 0x10a   :  { %v596_v17 = vpop.f32.mrb[6].mxu1 }
 0x10b   :  { %v827_v18 = vpop.f32.mrb[7].mxu1 }
 0x115   :  { %v811_v19 = vpop.f32.mrb[4].mxu0 }
 0x116   :  { %v812_v20 = vpop.f32.mrb[5].mxu0 }
 0x117   :  { %v813_v21 = vadd.f32 %v812_v20, %v811_v19  ;;  %v814_v22 = vpop.f32.mrb[6].mxu0 }
 0x118   :  { %v815_v23 = vpop.f32.mrb[7].mxu0 }
 0x119   :  { %v554_v24 = vadd.f32 %v813_v21, %v514_v14 }
 0x11b   :  { %v594_v25 = vadd.f32 %v593_v15, %v554_v24 }
 0x11d   :  { %v599_v26 = vmax.f32 %v594_v25, 0.0 }
 0x11f   :  { %v600_v27 = vpack.c.bf16 %v599_v26, %v599_v26 }
 0x121   :  { %833 = vmatmul.mubr.msk.bf16.vlgmr.msra.gmra.mrb[8].mxu1 %vm624_vm2, %v600_v27 }
 0x1f4   :  { %v662_v29 = vpop.f32.mrb[8].mxu1 }
 0x1f5   :  { %v663_v30 = vadd.f32 %v747_v28, %v662_v29  ;;  %v834_v31 = vpop.f32.mrb[9].mxu1 }
 0x1f6   :  { %v665_v32 = vpop.f32.mrb[10].mxu1 }
 0x1f7   :  { %v835_v33 = vpop.f32.mrb[11].mxu1  ;;  %v669_v34 = vsel %vm668_vm3, %v663_v30, -inf }
 0x1f8   :  { %670 = vmax.xlane.f32.xlu0 %v669_v34 }
 0x285   :  { %v671_v35 = vpop.xlane.xlu0 %670 }
 0x286   :  { %v672_v36 = vsub.f32 %v663_v30, %v671_v35 }
 0x288   :  { %v673_v37 = vmul.f32 1.442695, %v672_v36 }
 0x28a   :  { %890 = vpow2.f32 %v673_v37 }
 0x294   :  { %v891_v38 = vpop.eup %890 }
 0x295   :  { %v675_v39 = vsel %vm668_vm3, %v891_v38, 0.0 }
 0x296   :  { %676 = vadd.xlane.f32.xlu0 %v675_v39 }
 0x323   :  { %v677_v40 = vpop.xlane.xlu0 %676 }
 0x324   :  { %892 = vlog2.f32 %v677_v40 }
 0x32e   :  { %v893_v41 = vpop.eup %892 }
 0x32f   :  { %v679_v42 = vmul.f32 0.6931472, %v893_v41 }
 0x331   :  { %v680_v43 = vsub.f32 %v672_v36, %v679_v42 }
 0x333   :  { %681 = vst.msk [vmem:[#allocation2] sm:$0xff] %vm668_vm3, %v680_v43 }
 0x334   :  { %905 = shalt.err (!%p902_p4)
}
 0x335   :  { %s906_s13 = scalar_lea.hbm %s1153_s5, 128 }
 0x336   :  { %p907_p5 = scmp.ne.s32.totalorder %s1153_s5, %s906_s13  ;;  %p910_p6 = scmp.lt.u32.totalorder %s906_s13, %s1153_s5 }
 0x338   :  { %p912_p7 = pnand %p910_p6, %p907_p5 }
 0x33a   :  { %915 = shalt.err (!%p912_p7)
}
 0x33b   :  { %691 = dma.vmem_to_hbm [thread:$0]  %s689_s4, 128, %s1153_s5, [#allocation3]  }
 0x33c   :  { %916 = dma.done.wait [#allocation3], 128  }
 0x33d   :  { %917 = vsyncadd [#allocation3], 4294967168 }
 0x33e   :  { %695 = vsyncpa [#allocation3], 1 }

</bundles_post_ra>
